<compile_context>
chip_gen: v7x
topology: tpu7x:2x2x1
jax: 0.10.0
libtpu: 0.0.40
codegen_flags: <defaults>
</compile_context>

<pallas_src>
import numpy as np

import jax
import jax.numpy as jnp
from jax.experimental import pallas as pl
from jax.experimental.pallas import tpu as pltpu  # noqa: F401  (kept for TPU-specific tuning hooks)

BN_EPS = 1e-5
C1, C2, KS = 16, 64, 3          # conv1 / conv2 output channels, kernel size
IH = IW = 16                    # input spatial
OH1 = OW1 = 8                   # conv1 output spatial (16x16, k3 s2 p1)
OH2 = OW2 = 4                   # conv2 output spatial
PAD = 3                         # top/left zero padding of x used by the gathers
PW = IH + PAD                   # padded image extent (19)
T2 = KS * KS                    # 9 conv taps
WIDE = T2 * C1                  # 144 = conv2 im2col width


# --------------------------------------------------------------------------- #
# Static index maps / masks (plain numpy, computed once at import time).
# --------------------------------------------------------------------------- #
def _gather_maps():
    k = np.arange(KS)
    # P1 (BN1 stats): row (r, c), col (ki2, kj2); padded x row = 2r + ki2 + (PAD-1)
    r1 = 2 * np.arange(OH1)[:, None] + k[None, :] + (PAD - 1)            # (8, 3)
    g1 = r1[:, None, :, None] * PW + r1[None, :, None, :]                # (r, c, ki2, kj2)
    # P_wide: row (a2, b2), col (ki, kj, ki2, kj2); padded x row = 4a2 + 2ki + ki2
    rw = (4 * np.arange(OH2)[:, None, None]
          + 2 * k[None, :, None] + k[None, None, :])                     # (a2, ki, ki2)
    gw = rw[:, None, :, None, :, None] * PW + rw[None, :, None, :, None, :]
    return (g1.reshape(OH1 * OW1, T2).astype(np.int32),
            gw.reshape(OH2 * OW2, T2 * T2).astype(np.int32))


def _conv2_valid_mask():
    # 1.0 where the h1 tap of a conv2 output position is inside the 8x8 map.
    m = np.zeros((OH2, OW2, KS, KS), np.float32)
    for a2 in range(OH2):
        for b2 in range(OW2):
            for ki in range(KS):
                for kj in range(KS):
                    r, c = 2 * a2 + ki - 1, 2 * b2 + kj - 1
                    m[a2, b2, ki, kj] = float(0 <= r < OH1 and 0 <= c < OW1)
    return np.repeat(m.reshape(OH2 * OW2, T2), C1, axis=1)               # (16, 144)


_G1, _GW = _gather_maps()
_MASK16 = _conv2_valid_mask()


# --------------------------------------------------------------------------- #
# Fused kernel.
# --------------------------------------------------------------------------- #
def _full_spec(shape):
    # Single-program launch: every operand is one full-array block in VMEM.
    return pl.BlockSpec(shape, lambda: (0,) * len(shape))


def _make_kernel(n_batch):
    N = n_batch

    def kernel(p1_ref, pw_ref, mask_ref, w1_ref, w1bd_ref, w2_ref,
               bn1_ref, bn2_ref, fc_ref, out_ref):
        # ---- BN1 batch statistics from the non-duplicated conv1 output -------
        # (conv bias omitted everywhere: cancelled by the batch-mean subtraction)
        y1 = jnp.dot(p1_ref[...], w1_ref[...],
                     preferred_element_type=jnp.float32)                 # (64N, 16)
        m1 = jnp.mean(y1, axis=0, keepdims=True)
        v1 = jnp.mean(y1 * y1, axis=0, keepdims=True) - m1 * m1          # E[x^2]-m^2
        s1 = bn1_ref[0:1, :] * jax.lax.rsqrt(v1 + BN_EPS)                # (1, 16)
        t1 = bn1_ref[1:2, :] - m1 * s1                                   # (1, 16)
        st = jnp.concatenate([s1, t1], axis=0)                           # (2, 16)
        stw = jnp.concatenate([st] * T2, axis=1)                         # (2, 144)

        # ---- conv1 on the conv2-im2col-ordered patches (block-diag weight) ---
        y_wide = jnp.dot(pw_ref[...], w1bd_ref[...],
                         preferred_element_type=jnp.float32)             # (16N, 144)
        mask = jnp.concatenate([mask_ref[...]] * N, axis=0)              # (16N, 144)
        h_wide = jnp.maximum(y_wide * stw[0:1, :] + stw[1:2, :], 0.0) * mask

        # ---- conv2: one lane-dense (16N,144)@(144,64) bf16 matmul ------------
        y2 = jnp.dot(h_wide.astype(jnp.bfloat16), w2_ref[...],
                     preferred_element_type=jnp.float32)                 # (16N, 64)

        # ---- BN2 + ReLU (single-pass variance, fused multiply-add) -----------
        m2 = jnp.mean(y2, axis=0, keepdims=True)
        v2 = jnp.mean(y2 * y2, axis=0, keepdims=True) - m2 * m2
        s2 = bn2_ref[0:1, :] * jax.lax.rsqrt(v2 + BN_EPS)
        t2 = bn2_ref[1:2, :] - m2 * s2
        h2 = jnp.maximum(y2 * s2 + t2, 0.0)                              # (16N, 64)

        # ---- AdaptiveMaxPool2d((1,1)) + Linear --------------------------------
        pooled = jnp.max(h2.reshape(N, OH2 * OW2, C2), axis=1)           # (N, 64)
        out_ref[...] = (jnp.dot(pooled, fc_ref[0:C2, :],
                                preferred_element_type=jnp.float32)
                        + fc_ref[C2:C2 + 1, :])

    return kernel


def _fused_forward(p1, pw, kp, n_batch):
    num_classes = kp["fc"].shape[1]
    operands = (p1, pw, kp["mask"], kp["w1"], kp["w1bd"], kp["w2"],
                kp["bn1"], kp["bn2"], kp["fc"])
    return pl.pallas_call(
        _make_kernel(n_batch),
        out_shape=jax.ShapeDtypeStruct((n_batch, num_classes), jnp.float32),
        grid=(),
        in_specs=[_full_spec(op.shape) for op in operands],
        out_specs=_full_spec((n_batch, num_classes)),
    )(*operands)


# --------------------------------------------------------------------------- #
# Parameters: stored PyTorch-style, reshaped/cast for the kernel ONCE at init.
# --------------------------------------------------------------------------- #
def init_params(key, num_classes):
    ks = jax.random.split(key, 10)
    f32 = jnp.float32
    return {
        "conv1_w": 0.3 * jax.random.normal(ks[0], (C1, 1, KS, KS), f32),
        "conv1_b": 0.1 * jax.random.normal(ks[1], (C1,), f32),
        "bn1_g": 1.0 + 0.1 * jax.random.normal(ks[2], (C1,), f32),
        "bn1_b": 0.1 * jax.random.normal(ks[3], (C1,), f32),
        "conv2_w": 0.1 * jax.random.normal(ks[4], (C2, C1, KS, KS), f32),
        "conv2_b": 0.1 * jax.random.normal(ks[5], (C2,), f32),
        "bn2_g": 1.0 + 0.1 * jax.random.normal(ks[6], (C2,), f32),
        "bn2_b": 0.1 * jax.random.normal(ks[7], (C2,), f32),
        "fc_w": 0.1 * jax.random.normal(ks[8], (num_classes, C2), f32),
        "fc_b": 0.1 * jax.random.normal(ks[9], (num_classes,), f32),
    }


def prepare_params(params):
    """One-time reshape / block-diagonalisation / bf16 cast of the static weights."""
    bf16 = jnp.bfloat16
    w1 = jnp.transpose(params["conv1_w"], (2, 3, 1, 0)).reshape(T2, C1)            # (9, 16)
    w2 = jnp.transpose(params["conv2_w"], (2, 3, 1, 0)).reshape(T2 * C1, C2)       # (144, 64)
    eye = jnp.eye(T2, dtype=jnp.float32)
    w1bd = (eye[:, None, :, None] * w1[None, :, None, :]).reshape(T2 * T2, WIDE)   # (81, 144)
    bn1 = jnp.stack([params["bn1_g"], params["bn1_b"]]).astype(jnp.float32)        # (2, 16)
    bn2 = jnp.stack([params["bn2_g"], params["bn2_b"]]).astype(jnp.float32)        # (2, 64)
    fc = jnp.concatenate([params["fc_w"].T, params["fc_b"][None, :]],
                         axis=0).astype(jnp.float32)                               # (65, C)
    # conv1_b / conv2_b are intentionally NOT consumed: training-mode BatchNorm's
    # batch-mean subtraction cancels them exactly.
    return {"w1": w1.astype(bf16), "w1bd": w1bd.astype(bf16), "w2": w2.astype(bf16),
            "bn1": bn1, "bn2": bn2, "fc": fc,
            "mask": jnp.asarray(_MASK16, jnp.float32)}


@jax.jit
def net_forward(kparams, x_nchw):
    """Forward pass equivalent to Net.forward (training-mode BatchNorm)."""
    n = x_nchw.shape[0]
    xp = jnp.pad(x_nchw[:, 0], ((0, 0), (PAD, 0), (PAD, 0)))                       # (N, 19, 19)
    flat = xp.reshape(n, PW * PW)
    p1 = jnp.take(flat, _G1, axis=1).reshape(n * OH1 * OW1, T2).astype(jnp.bfloat16)
    pw = jnp.take(flat, _GW, axis=1).reshape(n * OH2 * OW2, T2 * T2).astype(jnp.bfloat16)
    return _fused_forward(p1, pw, kparams, n)


# --------------------------------------------------------------------------- #
# Pure-JAX f32 reference (matches the PyTorch module, training-mode BN).
# --------------------------------------------------------------------------- #
def _bn_train(y, gamma, beta):
    m = jnp.mean(y, axis=(0, 2, 3), keepdims=True)
    v = jnp.mean(jnp.square(y - m), axis=(0, 2, 3), keepdims=True)
    return ((y - m) * jax.lax.rsqrt(v + BN_EPS) * gamma[None, :, None, None]
            + beta[None, :, None, None])


def reference_forward(params, x):
    dn = ("NCHW", "OIHW", "NCHW")
    y1 = jax.lax.conv_general_dilated(
        x, params["conv1_w"], (2, 2), ((1, 1), (1, 1)), dimension_numbers=dn)
    y1 = y1 + params["conv1_b"][None, :, None, None]
    h1 = jnp.maximum(_bn_train(y1, params["bn1_g"], params["bn1_b"]), 0.0)
    y2 = jax.lax.conv_general_dilated(
        h1, params["conv2_w"], (2, 2), ((1, 1), (1, 1)), dimension_numbers=dn)
    y2 = y2 + params["conv2_b"][None, :, None, None]
    h2 = jnp.maximum(_bn_train(y2, params["bn2_g"], params["bn2_b"]), 0.0)
    pooled = jnp.max(h2, axis=(2, 3))                                              # (N, 64)
    return pooled @ params["fc_w"].T + params["fc_b"][None, :]


if __name__ == "__main__":
    num_classes = 10
    key = jax.random.PRNGKey(0)
    pkey, xkey = jax.random.split(key)

    params = init_params(pkey, num_classes)
    x = jax.random.normal(xkey, (2, 1, 16, 16), jnp.float32)    # NCHW, like PyTorch

    kparams = prepare_params(params)
    out = net_forward(kparams, x)
    out = jax.block_until_ready(out)

    assert out.shape == (2, num_classes)
    assert bool(jnp.all(jnp.isfinite(out)))

    # Reference check (bf16 MXU operands -> loose-ish tolerance).
    ref = reference_forward(params, x)
    assert bool(jnp.allclose(out, ref, rtol=5e-2, atol=1e-1))

    print("KERNEL_OK")
</pallas_src>

<mosaic_0001>
module attributes {stable_mosaic.version = 11 : i64} {
  func.func @kernel(%arg0: memref<128x9xbf16, #tpu.memory_space<vmem>>, %arg1: memref<32x81xbf16, #tpu.memory_space<vmem>>, %arg2: memref<16x144xf32, #tpu.memory_space<vmem>>, %arg3: memref<9x16xbf16, #tpu.memory_space<vmem>>, %arg4: memref<81x144xbf16, #tpu.memory_space<vmem>>, %arg5: memref<144x64xbf16, #tpu.memory_space<vmem>>, %arg6: memref<2x16xf32, #tpu.memory_space<vmem>>, %arg7: memref<2x64xf32, #tpu.memory_space<vmem>>, %arg8: memref<65x10xf32, #tpu.memory_space<vmem>>, %arg9: memref<2x10xf32, #tpu.memory_space<vmem>>) attributes {dimension_semantics = [], scalar_prefetch = 0 : i64, scratch_operands = 0 : i64, tpu.core_type = #tpu.core_type<tc>} {
    %c0 = arith.constant 0 : index
    %c0_0 = arith.constant 0 : index
    %0 = vector.load %arg0[%c0, %c0_0] : memref<128x9xbf16, #tpu.memory_space<vmem>>, vector<128x9xbf16>
    %c0_1 = arith.constant 0 : index
    %c0_2 = arith.constant 0 : index
    %1 = vector.load %arg3[%c0_1, %c0_2] : memref<9x16xbf16, #tpu.memory_space<vmem>>, vector<9x16xbf16>
    %cst = arith.constant dense<0.000000e+00> : vector<128x16xf32>
    %2 = tpu.matmul %0, %1, %cst {dimension_numbers = #tpu.dot_dimension_numbers<[1], [0], [0], [1], [0, 0, 1, 1], [], []>} : vector<128x9xbf16>, vector<9x16xbf16>, vector<128x16xf32> -> vector<128x16xf32>
    %cst_3 = arith.constant dense<0.000000e+00> : vector<16xf32>
    %3 = vector.multi_reduction <add>, %2, %cst_3 [0] : vector<128x16xf32> to vector<16xf32>
    %4 = vector.shape_cast %3 : vector<16xf32> to vector<1x16xf32>
    %cst_4 = arith.constant 1.280000e+02 : f32
    %5 = vector.broadcast %cst_4 : f32 to vector<1x16xf32>
    %6 = arith.divf %4, %5 : vector<1x16xf32>
    %7 = arith.mulf %2, %2 : vector<128x16xf32>
    %cst_5 = arith.constant dense<0.000000e+00> : vector<16xf32>
    %8 = vector.multi_reduction <add>, %7, %cst_5 [0] : vector<128x16xf32> to vector<16xf32>
    %9 = vector.shape_cast %8 : vector<16xf32> to vector<1x16xf32>
    %cst_6 = arith.constant 1.280000e+02 : f32
    %10 = vector.broadcast %cst_6 : f32 to vector<1x16xf32>
    %11 = arith.divf %9, %10 : vector<1x16xf32>
    %12 = arith.mulf %6, %6 : vector<1x16xf32>
    %13 = arith.subf %11, %12 : vector<1x16xf32>
    %c0_7 = arith.constant 0 : index
    %c0_8 = arith.constant 0 : index
    %14 = vector.load %arg6[%c0_7, %c0_8] : memref<2x16xf32, #tpu.memory_space<vmem>>, vector<1x16xf32>
    %cst_9 = arith.constant 9.99999974E-6 : f32
    %15 = vector.broadcast %cst_9 : f32 to vector<1x16xf32>
    %16 = arith.addf %13, %15 : vector<1x16xf32>
    %17 = math.rsqrt %16 : vector<1x16xf32>
    %18 = arith.mulf %14, %17 : vector<1x16xf32>
    %c1 = arith.constant 1 : index
    %c0_10 = arith.constant 0 : index
    %19 = vector.load %arg6[%c1, %c0_10] : memref<2x16xf32, #tpu.memory_space<vmem>>, vector<1x16xf32>
    %20 = arith.mulf %6, %18 : vector<1x16xf32>
    %21 = arith.subf %19, %20 : vector<1x16xf32>
    %22 = tpu.concatenate %18, %21 in 0 : vector<1x16xf32>, vector<1x16xf32> -> vector<2x16xf32>
    %23 = tpu.concatenate %22, %22, %22, %22, %22, %22, %22, %22, %22 in 1 : vector<2x16xf32>, vector<2x16xf32>, vector<2x16xf32>, vector<2x16xf32>, vector<2x16xf32>, vector<2x16xf32>, vector<2x16xf32>, vector<2x16xf32>, vector<2x16xf32> -> vector<2x144xf32>
    %c0_11 = arith.constant 0 : index
    %c0_12 = arith.constant 0 : index
    %24 = vector.load %arg1[%c0_11, %c0_12] : memref<32x81xbf16, #tpu.memory_space<vmem>>, vector<32x81xbf16>
    %c0_13 = arith.constant 0 : index
    %c0_14 = arith.constant 0 : index
    %25 = vector.load %arg4[%c0_13, %c0_14] : memref<81x144xbf16, #tpu.memory_space<vmem>>, vector<81x144xbf16>
    %cst_15 = arith.constant dense<0.000000e+00> : vector<32x144xf32>
    %26 = tpu.matmul %24, %25, %cst_15 {dimension_numbers = #tpu.dot_dimension_numbers<[1], [0], [0], [1], [0, 0, 1, 1], [], []>} : vector<32x81xbf16>, vector<81x144xbf16>, vector<32x144xf32> -> vector<32x144xf32>
    %c0_16 = arith.constant 0 : index
    %c0_17 = arith.constant 0 : index
    %27 = vector.load %arg2[%c0_16, %c0_17] : memref<16x144xf32, #tpu.memory_space<vmem>>, vector<16x144xf32>
    %28 = tpu.concatenate %27, %27 in 0 : vector<16x144xf32>, vector<16x144xf32> -> vector<32x144xf32>
    %29 = vector.extract_strided_slice %23 {offsets = [0, 0], sizes = [1, 144], strides = [1, 1]} : vector<2x144xf32> to vector<1x144xf32>
    %30 = vector.broadcast %29 : vector<1x144xf32> to vector<32x144xf32>
    %31 = arith.mulf %26, %30 : vector<32x144xf32>
    %32 = vector.extract_strided_slice %23 {offsets = [1, 0], sizes = [1, 144], strides = [1, 1]} : vector<2x144xf32> to vector<1x144xf32>
    %33 = vector.broadcast %32 : vector<1x144xf32> to vector<32x144xf32>
    %34 = arith.addf %31, %33 : vector<32x144xf32>
    %cst_18 = arith.constant 0.000000e+00 : f32
    %35 = vector.broadcast %cst_18 : f32 to vector<32x144xf32>
    %36 = arith.maximumf %34, %35 : vector<32x144xf32>
    %37 = arith.mulf %36, %28 : vector<32x144xf32>
    %38 = arith.truncf %37 : vector<32x144xf32> to vector<32x144xbf16>
    %c0_19 = arith.constant 0 : index
    %c0_20 = arith.constant 0 : index
    %39 = vector.load %arg5[%c0_19, %c0_20] : memref<144x64xbf16, #tpu.memory_space<vmem>>, vector<144x64xbf16>
    %cst_21 = arith.constant dense<0.000000e+00> : vector<32x64xf32>
    %40 = tpu.matmul %38, %39, %cst_21 {dimension_numbers = #tpu.dot_dimension_numbers<[1], [0], [0], [1], [0, 0, 1, 1], [], []>} : vector<32x144xbf16>, vector<144x64xbf16>, vector<32x64xf32> -> vector<32x64xf32>
    %cst_22 = arith.constant dense<0.000000e+00> : vector<64xf32>
    %41 = vector.multi_reduction <add>, %40, %cst_22 [0] : vector<32x64xf32> to vector<64xf32>
    %42 = vector.shape_cast %41 : vector<64xf32> to vector<1x64xf32>
    %cst_23 = arith.constant 3.200000e+01 : f32
    %43 = vector.broadcast %cst_23 : f32 to vector<1x64xf32>
    %44 = arith.divf %42, %43 : vector<1x64xf32>
    %45 = arith.mulf %40, %40 : vector<32x64xf32>
    %cst_24 = arith.constant dense<0.000000e+00> : vector<64xf32>
    %46 = vector.multi_reduction <add>, %45, %cst_24 [0] : vector<32x64xf32> to vector<64xf32>
    %47 = vector.shape_cast %46 : vector<64xf32> to vector<1x64xf32>
    %cst_25 = arith.constant 3.200000e+01 : f32
    %48 = vector.broadcast %cst_25 : f32 to vector<1x64xf32>
    %49 = arith.divf %47, %48 : vector<1x64xf32>
    %50 = arith.mulf %44, %44 : vector<1x64xf32>
    %51 = arith.subf %49, %50 : vector<1x64xf32>
    %c0_26 = arith.constant 0 : index
    %c0_27 = arith.constant 0 : index
    %52 = vector.load %arg7[%c0_26, %c0_27] : memref<2x64xf32, #tpu.memory_space<vmem>>, vector<1x64xf32>
    %cst_28 = arith.constant 9.99999974E-6 : f32
    %53 = vector.broadcast %cst_28 : f32 to vector<1x64xf32>
    %54 = arith.addf %51, %53 : vector<1x64xf32>
    %55 = math.rsqrt %54 : vector<1x64xf32>
    %56 = arith.mulf %52, %55 : vector<1x64xf32>
    %c1_29 = arith.constant 1 : index
    %c0_30 = arith.constant 0 : index
    %57 = vector.load %arg7[%c1_29, %c0_30] : memref<2x64xf32, #tpu.memory_space<vmem>>, vector<1x64xf32>
    %58 = arith.mulf %44, %56 : vector<1x64xf32>
    %59 = arith.subf %57, %58 : vector<1x64xf32>
    %60 = vector.broadcast %56 : vector<1x64xf32> to vector<32x64xf32>
    %61 = arith.mulf %40, %60 : vector<32x64xf32>
    %62 = vector.broadcast %59 : vector<1x64xf32> to vector<32x64xf32>
    %63 = arith.addf %61, %62 : vector<32x64xf32>
    %cst_31 = arith.constant 0.000000e+00 : f32
    %64 = vector.broadcast %cst_31 : f32 to vector<32x64xf32>
    %65 = arith.maximumf %63, %64 : vector<32x64xf32>
    %66 = vector.shape_cast %65 : vector<32x64xf32> to vector<2x16x64xf32>
    %cst_32 = arith.constant dense<0xFF800000> : vector<2x64xf32>
    %67 = vector.multi_reduction <maximumf>, %66, %cst_32 [1] : vector<2x16x64xf32> to vector<2x64xf32>
    %c0_33 = arith.constant 0 : index
    %c0_34 = arith.constant 0 : index
    %68 = vector.load %arg8[%c0_33, %c0_34] : memref<65x10xf32, #tpu.memory_space<vmem>>, vector<64x10xf32>
    %cst_35 = arith.constant dense<0.000000e+00> : vector<2x10xf32>
    %69 = tpu.matmul %67, %68, %cst_35 {dimension_numbers = #tpu.dot_dimension_numbers<[1], [0], [0], [1], [0, 0, 1, 1], [], []>} : vector<2x64xf32>, vector<64x10xf32>, vector<2x10xf32> -> vector<2x10xf32>
    %c64 = arith.constant 64 : index
    %c0_36 = arith.constant 0 : index
    %70 = vector.load %arg8[%c64, %c0_36] : memref<65x10xf32, #tpu.memory_space<vmem>>, vector<1x10xf32>
    %71 = vector.broadcast %70 : vector<1x10xf32> to vector<2x10xf32>
    %72 = arith.addf %69, %71 : vector<2x10xf32>
    %c0_37 = arith.constant 0 : index
    %c0_38 = arith.constant 0 : index
    %73 = vector.load %arg9[%c0_37, %c0_38] : memref<2x10xf32, #tpu.memory_space<vmem>>, vector<2x10xf32>
    tpu.vector_store %arg9[%c0_37, %c0_38], %72 {strides = array<i32>} : memref<2x10xf32, #tpu.memory_space<vmem>>, vector<2x10xf32>,
    return
  }
}

</mosaic_0001>

<bundles_post_ra>
// kernel: net_forward.1
= control target key start
LH: loop header
LB: loop body
LE: loop exit
PB: predicated region body
PF: predicated region fallthrough
CT: control target
= control target key end

     0   :  { %vm122_vm0 = vcmask 1043456   ;;  %vm123_vm1 = vcmask 1044480   ;;  %v1076_v2 = vmov 65535   ;;  %vm97_vm2 = vcmask 72704   ;;  %s1398_s0 = inlined_call_operand.vmem [shape: bf16[128,9], index: 0, kind: input, shape index: {}]   ;;  %s1399_s1 = inlined_call_operand.vmem [shape: bf16[32,81], index: 1, kind: input, shape index: {}]   ;;  %s1400_s2 = inlined_call_operand.vmem [shape: f32[16,144], index: 2, kind: input, shape index: {}]   ;;  %s1401_s3 = inlined_call_operand.vmem [shape: bf16[9,16], index: 3, kind: input, shape index: {}]   ;;  %s1402_s4 = inlined_call_operand.vmem [shape: bf16[81,144], index: 4, kind: input, shape index: {}]   ;;  %s1403_s5 = inlined_call_operand.vmem [shape: bf16[144,64], index: 5, kind: input, shape index: {}]   ;;  %s1404_s6 = inlined_call_operand.vmem [shape: f32[2,16], index: 6, kind: input, shape index: {}]   ;;  %s1405_s7 = inlined_call_operand.vmem [shape: f32[2,64], index: 7, kind: input, shape index: {}]   ;;  %s1406_s8 = inlined_call_operand.vmem [shape: f32[65,10], index: 8, kind: input, shape index: {}]   ;;  %s1407_s9 = inlined_call_operand.hbm [shape: f32[2,10], index: 9, kind: output, shape index: {}]  }
   0x1   :  { %v1011_v0 = vld [vmem:[%s1401_s3] sm:$0x1f]   ;;  %v124_v3 = vsel %vm122_vm0, 4294967295, %v1076_v2  ;;  %v1013_v6 = vld [vmem:[%s1398_s0 + $0x8] sm:$0xff]   ;;  %v1077_v7 = vmov 0   ;;  %v1014_v8 = vld [vmem:[%s1398_s0 + $0x10] sm:$0xff]  }
   0x2   :  { %v1012_v1 = vld [vmem:[%s1398_s0] sm:$0xff]   ;;  %v125_v4 = vsel %vm123_vm1, %v124_v3, 0  ;;  %496 = vmatprep.mubr.bf16.mxu1 %v1077_v7  ;;  %v1023_v11 = vld [vmem:[%s1402_s4 + $0x14] ss:$8 sps:$4 sm:$0xff]   ;;  %v1025_v12 = vld [vmem:[%s1402_s4 + $0x10] ss:$8 sps:$4 sm:$0xff]  }
   0x3   :  { %951 = vmatprep.mubr.msk.bf16.mxu0 %vm97_vm2, %v1012_v1  ;;  %v127_v5 = vand.u32 %v1011_v0, %v125_v4  ;;  %v1020_v9 = vld [vmem:[%s1402_s4 + $0x4] ss:$8 sps:$4 sm:$0xff]   ;;  %v1022_v10 = vld [vmem:[%s1402_s4] ss:$8 sps:$4 sm:$0xff]   ;;  %vm332_vm3 = vcmask 1040384   ;;  %v1015_v13 = vld [vmem:[%s1398_s0 + $0x18] sm:$0xff]  }
   0x4   :  { %464 = vmatprep.subr.bf16.mxu1 %v1020_v9  ;;  %v1026_v14 = vld [vmem:[%s1402_s4 + $0x24] ss:$8 sps:$4 sm:$0xff]   ;;  %v1028_v16 = vld [vmem:[%s1402_s4 + $0x20] ss:$8 sps:$4 sm:$0xff]   ;;  %v457_v17 = vsel %vm332_vm3, 65535, %v1077_v7  ;;  %v1018_v23 = vld [vmem:[%s1398_s0 + $0x30] sm:$0xff]  }
   0x5   :  { %949 = vmatprep.subr.bf16.mxu0 %v127_v5  ;;  %465 = vmatpush1.bf16.msra.mxu1 %v1022_v10  ;;  %v1016_v15 = vld [vmem:[%s1398_s0 + $0x20] sm:$0xff]   ;;  %v1029_v18 = vld [vmem:[%s1402_s4 + $0x34] ss:$8 sps:$4 sm:$0xff]   ;;  %v1031_v20 = vld [vmem:[%s1402_s4 + $0x30] ss:$8 sps:$4 sm:$0xff]  }
   0x6   :  { %950 = vmatpush3.bf16.msra.mxu0 %v127_v5  ;;  %466 = vmatprep.subr.bf16.mxu1 %v1023_v11  ;;  %v383_v19 = vld [vmem:[%s1402_s4 + $0x50] sm:$0x11]  ;;  %v1017_v21 = vld [vmem:[%s1398_s0 + $0x28] sm:$0xff]  }
   0x7   :  { %651 = vmatprep.subr.bf16.mxu0 %v1077_v7  ;;  %v1032_v22 = vld [vmem:[%s1402_s4 + $0x44] ss:$8 sps:$4 sm:$0xff]   ;;  %v915_v24 = vcombine.high %v383_v19, %v383_v19 }
   0x9   :  { %952 = vmatmul.mubr.msk.bf16.vlgmr.msra.gmra.mrb[0].mxu0 %vm97_vm2, %v1013_v6  ;;  %467 = vmatpush1.bf16.msra.mxu1 %v1025_v12 }
   0xa   :  { %955 = vmatprep.mubr.msk.bf16.mxu0 %vm97_vm2, %v1014_v8  ;;  %468 = vmatprep.subr.bf16.mxu1 %v1026_v14 }
   0xd   :  { %469 = vmatpush1.bf16.msra.mxu1 %v1028_v16 }
   0xe   :  { %470 = vmatprep.subr.bf16.mxu1 %v1029_v18 }
  0x11   :  { %956 = vmatmul.mubr.msk.bf16.gmra.mrb[4].mxu0 %vm97_vm2, %v1015_v13 }
  0x12   :  { %959 = vmatprep.mubr.msk.bf16.mxu0 %vm97_vm2, %v1016_v15 }
  0x13   :  { %14 = vsyncpa [#allocation3], 0  ;;  %471 = vmatpush1.bf16.msra.mxu1 %v1031_v20  ;;  %v1034_v25 = vld [vmem:[%s1402_s4 + $0x40] ss:$8 sps:$4 sm:$0xff]   ;;  %v914_v26 = vcombine.low %v383_v19, %v383_v19  ;;  %v462_v27 = vand.u32 %v915_v24, %v457_v17  ;;  %v1019_v29 = vld [vmem:[%s1398_s0 + $0x38] sm:$0xff]   ;;  %vm449_vm4 = vcmask 662528  }
  0x14   :  { %472 = vmatprep.subr.bf16.mxu1 %v1032_v22  ;;  %v1037_v30 = vld [vmem:[%s1399_s1] sm:$0xff]   ;;  %v1038_v31 = vld [vmem:[%s1399_s1 + $0x8] sm:$0xff]   ;;  %v1041_v34 = vld [vmem:[%s1403_s5 + $0x10] sm:$0xff]   ;;  %vm226_vm5 = vcmask 130048   ;;  %s1079_s21 = smov 16   ;;  %s1080_s24 = smov 64  }
  0x15   :  { %v459_v28 = vand.u32 %v914_v26, %v457_v17  ;;  %v1039_v32 = vld [vmem:[%s1403_s5] sm:$0xff]   ;;  %v1040_v33 = vld [vmem:[%s1403_s5 + $0x8] sm:$0xff]   ;;  %s1081_s30 = smov 32   ;;  %s1082_s0 = smov 96   ;;  %vm357_vm6 = vcmask 261120   ;;  %vm359_vm7 = vcmask 392192  }
  0x16   :  { %652 = vmatpush1.bf16.msra.mxu0 %v1039_v32  ;;  %s1083_s12 = smov 80   ;;  %s1084_s1 = smov 112   ;;  %vm361_vm8 = vcmask 523264   ;;  %vm363_vm9 = vcmask 654336   ;;  %vm365_vm10 = vcmask 785408   ;;  %vm367_vm11 = vcmask 916480  }
  0x17   :  { %473 = vmatpush1.bf16.msra.mxu1 %v1034_v25  ;;  %653 = vmatprep.subr.bf16.mxu0 %v1077_v7  ;;  %vm1086_vm12 = vmmov 0   ;;  %vm795_vm13 = vcmask 1041409   ;;  %s1088_s11 = smov [#allocation2]   ;;  %vm869_vm14 = vcmask 74752  }
  0x18   :  { %474 = vmatprep.subr.bf16.mxu1 %v462_v27 }
  0x19   :  { %960 = vmatmul.mubr.msk.bf16.gmra.mrb[8].mxu0 %vm97_vm2, %v1017_v21 }
  0x1a   :  { %963 = vmatprep.mubr.msk.bf16.mxu0 %vm97_vm2, %v1018_v23  ;;  %654 = vmatpush1.bf16.msra.mxu0 %v1040_v33 }
  0x1b   :  { %475 = vmatpush1.bf16.msra.mxu1 %v459_v28  ;;  %655 = vmatprep.subr.bf16.mxu0 %v1077_v7 }
  0x1e   :  { %916 = vmatmul.mubr.msk.bf16.vlgmr.msra.gmra.mrb[0].mxu1 %vm449_vm4, %v1037_v30  ;;  %656 = vmatpush1.bf16.msra.mxu0 %v1041_v34 }
  0x1f   :  { %506 = vmatprep.mubr.bf16.mxu1 %v1077_v7  ;;  %657 = vmatprep.subr.bf16.mxu0 %v1077_v7 }
  0x21   :  { %964 = vmatmul.mubr.msk.bf16.gmra.mrb[12].mxu0 %vm97_vm2, %v1019_v29 }
  0x26   :  { %917 = vmatmul.mubr.msk.bf16.gmra.mrb[4].mxu1 %vm449_vm4, %v1038_v31 }
  0xdc   :  { %v953_v35 = vpop.f32.mrb[0].mxu0 }
  0xdd   :  { %v163_v36 = vpop.f32.mrb[1].mxu0  ;;  %v268_v40 = vmul.f32 %v953_v35, %v953_v35  ;;  %v230_v45 = vsel %vm226_vm5, %v953_v35, 0.0 }
  0xde   :  { %v266_v37 = vmul.f32 %v163_v36, %v163_v36  ;;  %v954_v38 = vpop.f32.mrb[2].mxu0  ;;  %v227_v41 = vsel %vm226_vm5, %v163_v36, 0.0 }
  0xdf   :  { %v166_v39 = vpop.f32.mrb[3].mxu0  ;;  %v269_v47 = vmul.f32 %v954_v38, %v954_v38  ;;  %v285_v51 = vsel %vm226_vm5, %v268_v40, 0.0  ;;  %v232_v52 = vsel %vm226_vm5, %v954_v38, 0.0 }
  0xe0   :  { %v228_v42 = vsel %vm226_vm5, %v166_v39, 0.0  ;;  %v267_v43 = vmul.f32 %v166_v39, %v166_v39  ;;  %v282_v46 = vsel %vm226_vm5, %v266_v37, 0.0 }
  0xe1   :  { %v229_v44 = vadd.f32 %v228_v42, %v227_v41  ;;  %v287_v57 = vsel %vm226_vm5, %v269_v47, 0.0 }
  0xe2   :  { %v283_v48 = vsel %vm226_vm5, %v267_v43, 0.0 }
  0xe3   :  { %v231_v49 = vadd.f32 %v230_v45, %v229_v44  ;;  %v284_v50 = vadd.f32 %v283_v48, %v282_v46 }
  0xe4   :  { %v957_v53 = vpop.f32.mrb[4].mxu0 }
  0xe5   :  { %v286_v54 = vadd.f32 %v285_v51, %v284_v50  ;;  %v179_v55 = vpop.f32.mrb[5].mxu0  ;;  %v233_v56 = vadd.f32 %v232_v52, %v231_v49  ;;  %v272_v0 = vmul.f32 %v957_v53, %v957_v53  ;;  %v238_v6 = vsel %vm226_vm5, %v957_v53, 0.0 }
  0xe6   :  { %v234_v58 = vsel %vm226_vm5, %v179_v55, 0.0  ;;  %v270_v59 = vmul.f32 %v179_v55, %v179_v55  ;;  %v958_v60 = vpop.f32.mrb[6].mxu0 }
  0xe7   :  { %v235_v61 = vadd.f32 %v234_v58, %v233_v56  ;;  %v288_v62 = vadd.f32 %v287_v57, %v286_v54  ;;  %v182_v63 = vpop.f32.mrb[7].mxu0  ;;  %v273_v8 = vmul.f32 %v958_v60, %v958_v60  ;;  %v293_v12 = vsel %vm226_vm5, %v272_v0, 0.0 }
  0xe8   :  { %v289_v1 = vsel %vm226_vm5, %v270_v59, 0.0  ;;  %v236_v2 = vsel %vm226_vm5, %v182_v63, 0.0  ;;  %v271_v3 = vmul.f32 %v182_v63, %v182_v63  ;;  %v240_v13 = vsel %vm226_vm5, %v958_v60, 0.0 }
  0xe9   :  { %v290_v4 = vadd.f32 %v289_v1, %v288_v62  ;;  %v237_v5 = vadd.f32 %v236_v2, %v235_v61  ;;  %v295_v18 = vsel %vm226_vm5, %v273_v8, 0.0 }
  0xea   :  { %v291_v9 = vsel %vm226_vm5, %v271_v3, 0.0 }
  0xeb   :  { %v239_v10 = vadd.f32 %v238_v6, %v237_v5  ;;  %v292_v11 = vadd.f32 %v291_v9, %v290_v4 }
  0xec   :  { %v961_v14 = vpop.f32.mrb[8].mxu0 }
  0xed   :  { %v294_v15 = vadd.f32 %v293_v12, %v292_v11  ;;  %v195_v16 = vpop.f32.mrb[9].mxu0  ;;  %v241_v17 = vadd.f32 %v240_v13, %v239_v10  ;;  %v276_v25 = vmul.f32 %v961_v14, %v961_v14  ;;  %v246_v31 = vsel %vm226_vm5, %v961_v14, 0.0 }
  0xee   :  { %v242_v19 = vsel %vm226_vm5, %v195_v16, 0.0  ;;  %v274_v20 = vmul.f32 %v195_v16, %v195_v16  ;;  %v962_v21 = vpop.f32.mrb[10].mxu0 }
  0xef   :  { %v243_v22 = vadd.f32 %v242_v19, %v241_v17  ;;  %v296_v23 = vadd.f32 %v295_v18, %v294_v15  ;;  %v198_v24 = vpop.f32.mrb[11].mxu0  ;;  %v277_v32 = vmul.f32 %v962_v21, %v962_v21  ;;  %v301_v36 = vsel %vm226_vm5, %v276_v25, 0.0 }
  0xf0   :  { %v297_v26 = vsel %vm226_vm5, %v274_v20, 0.0  ;;  %v244_v27 = vsel %vm226_vm5, %v198_v24, 0.0  ;;  %v275_v28 = vmul.f32 %v198_v24, %v198_v24  ;;  %v248_v37 = vsel %vm226_vm5, %v962_v21, 0.0 }
  0xf1   :  { %v298_v29 = vadd.f32 %v297_v26, %v296_v23  ;;  %v245_v30 = vadd.f32 %v244_v27, %v243_v22  ;;  %v303_v42 = vsel %vm226_vm5, %v277_v32, 0.0  ;;  %v1255_v46 = vpop.f32.mrb[0].mxu1 }
  0xf2   :  { %v299_v33 = vsel %vm226_vm5, %v275_v28, 0.0  ;;  %v1257_v50 = vpop.f32.mrb[1].mxu1  ;;  %v1042_v28 = vld [vmem:[%s1403_s5 + $0x18] sm:$0xff]  }
  0xf3   :  { %v247_v34 = vadd.f32 %v246_v31, %v245_v30  ;;  %v300_v35 = vadd.f32 %v299_v33, %v298_v29  ;;  %v1261_v55 = vpop.f32.mrb[2].mxu1  ;;  %v322_v29 = vld [vmem:[%s1404_s6] sm:$0x1]  ;;  %v521_v30 = vlaneseq  ;;  %658 = vmatpush1.bf16.msra.mxu0 %v1042_v28  ;;  %v326_v33 = vld [vmem:[%s1404_s6 + $0x1] sm:$0x1]  ;;  %s1078_s6 = smov 48  }
  0xf4   :  { %v965_v38 = vpop.f32.mrb[12].mxu0  ;;  %v1263_v58 = vpop.f32.mrb[3].mxu1  ;;  %659 = vmatprep.subr.bf16.mxu0 %v1077_v7 }
  0xf5   :  { %v302_v39 = vadd.f32 %v301_v36, %v300_v35  ;;  %v211_v40 = vpop.f32.mrb[13].mxu0  ;;  %v249_v41 = vadd.f32 %v248_v37, %v247_v34  ;;  %v280_v51 = vmul.f32 %v965_v38, %v965_v38  ;;  %v254_v59 = vsel %vm226_vm5, %v965_v38, 0.0  ;;  %v1043_v35 = vld [vmem:[%s1403_s5 + $0x20] sm:$0xff]  }
  0xf6   :  { %v250_v43 = vsel %vm226_vm5, %v211_v40, 0.0  ;;  %v278_v44 = vmul.f32 %v211_v40, %v211_v40  ;;  %v966_v45 = vpop.f32.mrb[14].mxu0  ;;  %v1284_v34 = vshrl.u32 %v521_v30, 7 }
  0xf7   :  { %v251_v47 = vadd.f32 %v250_v43, %v249_v41  ;;  %v304_v48 = vadd.f32 %v303_v42, %v302_v39  ;;  %v214_v49 = vpop.f32.mrb[15].mxu0  ;;  %v281_v60 = vmul.f32 %v966_v45, %v966_v45  ;;  %v309_v0 = vsel %vm226_vm5, %v280_v51, 0.0  ;;  %660 = vmatpush1.bf16.msra.mxu0 %v1043_v35  ;;  %v1044_v39 = vld [vmem:[%s1403_s5 + $0x28] sm:$0xff]  }
  0xf8   :  { %v305_v52 = vsel %vm226_vm5, %v278_v44, 0.0  ;;  %v252_v53 = vsel %vm226_vm5, %v214_v49, 0.0  ;;  %v279_v54 = vmul.f32 %v214_v49, %v214_v49  ;;  %v256_v1 = vsel %vm226_vm5, %v966_v45, 0.0  ;;  %661 = vmatprep.subr.bf16.mxu0 %v1077_v7  ;;  %v1045_v44 = vld [vmem:[%s1403_s5 + $0x30] sm:$0xff]  }
  0xf9   :  { %v306_v56 = vadd.f32 %v305_v52, %v304_v48  ;;  %v253_v57 = vadd.f32 %v252_v53, %v251_v47  ;;  %v311_v4 = vsel %vm226_vm5, %v281_v60, 0.0  ;;  %v1270_v5 = vpop.f32.mrb[4].mxu1  ;;  %v1291_v38 = vsub.s32 0, %v1284_v34 }
  0xfa   :  { %v307_v61 = vsel %vm226_vm5, %v279_v54, 0.0  ;;  %v510_v9 = vpop.f32.mrb[5].mxu1  ;;  %v539_v41 = vsub.s32 1, %v1284_v34 }
  0xfb   :  { %v255_v62 = vadd.f32 %v254_v59, %v253_v57  ;;  %v308_v63 = vadd.f32 %v307_v61, %v306_v56  ;;  %v1272_v10 = vpop.f32.mrb[6].mxu1  ;;  %662 = vmatpush1.bf16.msra.mxu0 %v1044_v39  ;;  %v1046_v57 = vld [vmem:[%s1403_s5 + $0x38] sm:$0xff]  }
  0xfc   :  { %v514_v13 = vpop.f32.mrb[7].mxu1  ;;  %663 = vmatprep.subr.bf16.mxu0 %v1077_v7 }
  0xfd   :  { %v257_v2 = vadd.f32 %v256_v1, %v255_v62  ;;  %v310_v3 = vadd.f32 %v309_v0, %v308_v63 }
  0xff   :  { %v258_v6 = vrot.slane %v257_v2, 4  ;;  %v312_v8 = vadd.f32 %v311_v4, %v310_v3  ;;  %664 = vmatpush1.bf16.msra.mxu0 %v1045_v44  ;;  %v1047_v3 = vld [vmem:[%s1403_s5 + $0x40] sm:$0xff]   ;;  %v1085_v44 = vmov 0.0|0.0  }
 0x100   :  { %665 = vmatprep.subr.bf16.mxu0 %v1077_v7  ;;  %986 = vmatprep.subr.bf16.mxu1 %v1085_v44 }
 0x101   :  { %v259_v11 = vadd.f32 %v258_v6, %v257_v2  ;;  %v313_v12 = vrot.slane %v312_v8, 4 }
 0x103   :  { %v260_v14 = vrot.slane %v259_v11, 2  ;;  %v314_v15 = vadd.f32 %v313_v12, %v312_v8  ;;  %666 = vmatpush1.bf16.msra.mxu0 %v1046_v57  ;;  %v1087_v57 = vmov 0.0  }
 0x104   :  { %667 = vmatprep.subr.bf16.mxu0 %v1077_v7  ;;  %983 = vmatprep.mubr.msk.f32.mxu1 %vm1086_vm12, %v1087_v57 }
 0x105   :  { %v261_v16 = vadd.f32 %v260_v14, %v259_v11  ;;  %v315_v17 = vrot.slane %v314_v15, 2 }
 0x107   :  { %v262_v18 = vrot.slane %v261_v16, 1  ;;  %v316_v19 = vadd.f32 %v315_v17, %v314_v15  ;;  %668 = vmatpush1.bf16.msra.mxu0 %v1047_v3 }
 0x109   :  { %v263_v20 = vadd.f32 %v262_v18, %v261_v16  ;;  %v317_v21 = vrot.slane %v316_v19, 1 }
 0x10b   :  { %v265_v22 = vmul.f32 0.0078125, %v263_v20  ;;  %v318_v23 = vadd.f32 %v317_v21, %v316_v19 }
 0x10d   :  { %v319_v24 = vmul.f32 0.0078125, %v318_v23  ;;  %v320_v25 = vmul.f32 %v265_v22, %v265_v22 }
 0x10f   :  { %v321_v26 = vsub.f32 %v319_v24, %v320_v25 }
 0x111   :  { %v323_v27 = vadd.f32 1e-05, %v321_v26 }
 0x113   :  { %1048 = vrsqrt.f32 %v323_v27 }
 0x11d   :  { %v1049_v31 = vpop.eup %1048 }
 0x11e   :  { %v325_v32 = vmul.f32 %v1049_v31, %v322_v29 }
 0x120   :  { %v327_v36 = vmul.f32 %v325_v32, %v265_v22 }
 0x122   :  { %v328_v37 = vsub.f32 %v326_v33, %v327_v36  ;;  %v519_v33 = vld [vmem:[%s1400_s2 + $0x10] sm:$0xff] }
 0x124   :  { %v330_v40 = vrot.slane %v328_v37, 7 }
 0x126   :  { %v333_v42 = vsel %vm332_vm3, %v325_v32, %v330_v40  ;;  %v517_v32 = vld [vmem:[%s1400_s2] sm:$0xff] }
 0x127   :  { %v528_v43 = vrot.slane %v333_v42, %v1291_v38  ;;  %341 = vrot.lane.b32.xlu1 %v333_v42, %s1078_s6  ;;  %335 = vrot.lane.b32.xlu0 %v333_v42, %s1079_s21  ;;  %v544_v45 = vrot.slane %v333_v42, %v539_v41 }
 0x129   :  { %v530_v47 = vmul.f32 %v528_v43, %v1257_v50  ;;  %v532_v48 = vmul.f32 %v528_v43, %v1263_v58  ;;  %v534_v49 = vmul.f32 %v528_v43, %v510_v9  ;;  %v536_v51 = vmul.f32 %v528_v43, %v514_v13  ;;  %v518_v50 = vld [vmem:[%s1400_s2 + $0x8] sm:$0xff]  ;;  %v520_v58 = vld [vmem:[%s1400_s2 + $0x18] sm:$0xff] }
 0x12b   :  { %v546_v52 = vadd.f32 %v544_v45, %v530_v47  ;;  %v548_v53 = vadd.f32 %v544_v45, %v532_v48  ;;  %v550_v54 = vadd.f32 %v544_v45, %v534_v49  ;;  %v552_v56 = vadd.f32 %v544_v45, %v536_v51  ;;  %344 = vrot.lane.b32.xlu1 %v333_v42, %s1080_s24  ;;  %v782_v45 = vld [vmem:[%s1406_s8 + $0x10] sm:$0xff]  ;;  %v783_v47 = vld [vmem:[%s1406_s8 + $0x18] sm:$0xff]  ;;  %v784_v49 = vld [vmem:[%s1406_s8 + $0x20] sm:$0xff] }
 0x12c   :  { %338 = vrot.lane.b32.xlu0 %v333_v42, %s1081_s30  ;;  %v990_v48 = vpack.c.bf16 %v783_v47, %v782_v45  ;;  %v785_v51 = vld [vmem:[%s1406_s8 + $0x28] sm:$0xff] }
 0x12d   :  { %v554_v59 = vmax.f32 %v546_v52, 0.0  ;;  %v556_v60 = vmax.f32 %v548_v53, 0.0  ;;  %v558_v61 = vmax.f32 %v550_v54, 0.0  ;;  %v560_v62 = vmax.f32 %v552_v56, 0.0  ;;  %v786_v53 = vld [vmem:[%s1406_s8 + $0x30] sm:$0xff]  ;;  %v787_v54 = vld [vmem:[%s1406_s8 + $0x38] sm:$0xff] }
 0x12e   :  { %v993_v52 = vpack.c.bf16 %v785_v51, %v784_v49  ;;  %v996_v56 = vpack.c.bf16 %v787_v54, %v786_v53 }
 0x12f   :  { %v562_v63 = vmul.f32 %v554_v59, %v518_v50  ;;  %v564_v0 = vmul.f32 %v556_v60, %v520_v58  ;;  %v566_v1 = vmul.f32 %v558_v61, %v518_v50  ;;  %v568_v2 = vmul.f32 %v560_v62, %v520_v58  ;;  %350 = vrot.lane.b32.xlu1 %v333_v42, %s1082_s0 }
 0x130   :  { %347 = vrot.lane.b32.xlu0 %v333_v42, %s1083_s12  ;;  %s877_s12 = sshll.u32 %s1088_s11, 4  ;;  %s878_s12 = int_to_ptr.vmem [resolvable:$true] %s877_s12 }
 0x131   :  { %v570_v4 = vpack.c.bf16 %v564_v0, %v562_v63  ;;  %v572_v6 = vpack.c.bf16 %v568_v2, %v566_v1  ;;  %p1057_p1 = scmp.lt.s32.totalorder %s878_s12, %s878_s12 }
 0x133   :  { %927 = vmatprep.mubr.msk.bf16.mxu0 %vm226_vm5, %v570_v4 }
 0x134   :  { %353 = vrot.lane.b32.xlu0 %v333_v42, %s1084_s1  ;;  %s1052_s1 = scalar_lea.vmem %s878_s12, 32 }
 0x135   :  { %p1053_p0 = scmp.ne.s32.totalorder %s878_s12, %s1052_s1  ;;  %p1058_p2 = scmp.lt.s32.totalorder %s1052_s1, %s1052_s1 }
 0x137   :  { %p1059_p3 = por %p1058_p2, %p1057_p1 }
 0x139   :  { %p1060_p4 = pnand %p1059_p3, %p1053_p0 }
 0x199   :  { %v342_v7 = vpop.permute.xlu1 %341  ;;  %v336_v8 = vpop.permute.xlu0 %335 }
 0x19a   :  { %v356_v11 = vsel %vm226_vm5, %v333_v42, %v336_v8  ;;  %v781_v42 = vld [vmem:[%s1406_s8 + $0x8] sm:$0xff] }
 0x19d   :  { %v345_v9 = vpop.permute.xlu1 %344 }
 0x19e   :  { %v339_v12 = vpop.permute.xlu0 %338 }
 0x19f   :  { %v358_v13 = vsel %vm357_vm6, %v356_v11, %v339_v12 }
 0x1a0   :  { %v360_v14 = vsel %vm359_vm7, %v358_v13, %v342_v7 }
 0x1a1   :  { %v362_v15 = vsel %vm361_vm8, %v360_v14, %v345_v9  ;;  %v351_v17 = vpop.permute.xlu1 %350 }
 0x1a2   :  { %v348_v16 = vpop.permute.xlu0 %347 }
 0x1a3   :  { %v364_v18 = vsel %vm363_vm9, %v362_v15, %v348_v16 }
 0x1a4   :  { %v366_v19 = vsel %vm365_vm10, %v364_v18, %v351_v17 }
 0x1a6   :  { %v354_v20 = vpop.permute.xlu0 %353 }
 0x1a7   :  { %v368_v21 = vsel %vm367_vm11, %v366_v19, %v354_v20 }
 0x1a8   :  { %v524_v22 = vrot.slane %v368_v21, %v1291_v38  ;;  %v540_v23 = vrot.slane %v368_v21, %v539_v41  ;;  %v780_v41 = vld [vmem:[%s1406_s8] sm:$0xff] }
 0x1a9   :  { %v987_v43 = vpack.c.bf16 %v781_v42, %v780_v41 }
 0x1aa   :  { %v529_v24 = vmul.f32 %v524_v22, %v1255_v46  ;;  %v531_v25 = vmul.f32 %v524_v22, %v1261_v55  ;;  %v533_v26 = vmul.f32 %v524_v22, %v1270_v5  ;;  %v535_v27 = vmul.f32 %v524_v22, %v1272_v10 }
 0x1ab   :  { %988 = vmatpush3.bf16.msra.mxu1 %v987_v43 }
 0x1ac   :  { %v545_v28 = vadd.f32 %v540_v23, %v529_v24  ;;  %v547_v29 = vadd.f32 %v540_v23, %v531_v25  ;;  %v549_v30 = vadd.f32 %v540_v23, %v533_v26  ;;  %v551_v31 = vadd.f32 %v540_v23, %v535_v27  ;;  %989 = vmatprep.subr.bf16.mxu1 %v1085_v44 }
 0x1ae   :  { %v553_v34 = vmax.f32 %v545_v28, 0.0  ;;  %v555_v46 = vmax.f32 %v547_v29, 0.0  ;;  %v557_v35 = vmax.f32 %v549_v30, 0.0  ;;  %v559_v55 = vmax.f32 %v551_v31, 0.0 }
 0x1af   :  { %991 = vmatpush3.bf16.msra.mxu1 %v990_v48 }
 0x1b0   :  { %v561_v36 = vmul.f32 %v553_v34, %v517_v32  ;;  %v563_v5 = vmul.f32 %v555_v46, %v519_v33  ;;  %v565_v37 = vmul.f32 %v557_v35, %v517_v32  ;;  %v567_v10 = vmul.f32 %v559_v55, %v519_v33  ;;  %992 = vmatprep.subr.bf16.mxu1 %v1085_v44 }
 0x1b2   :  { %v569_v39 = vpack.c.bf16 %v563_v5, %v561_v36  ;;  %v571_v40 = vpack.c.bf16 %v567_v10, %v565_v37  ;;  %v735_v36 = vld [vmem:[%s1405_s7] sm:$0x1]  ;;  %v739_v10 = vld [vmem:[%s1405_s7 + $0x1] sm:$0x1] }
 0x1b3   :  { %994 = vmatpush3.bf16.msra.mxu1 %v993_v52 }
 0x1b4   :  { %684 = vmatmul.mubr.bf16.vlgmr.msra.gmra.mrb[16].mxu0 %v569_v39  ;;  %995 = vmatprep.subr.bf16.mxu1 %v1085_v44 }
 0x1b5   :  { %928 = vmatprep.mubr.msk.bf16.mxu0 %vm226_vm5, %v572_v6 }
 0x1b7   :  { %997 = vmatpush3.bf16.msra.mxu1 %v996_v56 }
 0x1bc   :  { %692 = vmatmul.mubr.bf16.gmra.mrb[20].mxu0 %v571_v40 }
 0x287   :  { %v685_v50 = vpop.f32.mrb[16].mxu0 }
 0x288   :  { %v715_v58 = vmul.f32 %v685_v50, %v685_v50  ;;  %v687_v59 = vpop.f32.mrb[17].mxu0  ;;  %v700_v61 = vsel %vm361_vm8, %v685_v50, 0.0 }
 0x289   :  { %v688_v60 = vpop.f32.mrb[18].mxu0 }
 0x28a   :  { %v701_v62 = vsel %vm361_vm8, %v688_v60, 0.0  ;;  %v716_v63 = vmul.f32 %v688_v60, %v688_v60  ;;  %v690_v0 = vpop.f32.mrb[19].mxu0  ;;  %v719_v2 = vsel %vm361_vm8, %v715_v58, 0.0 }
 0x28b   :  { %v702_v1 = vadd.f32 %v701_v62, %v700_v61 }
 0x28c   :  { %v720_v3 = vsel %vm361_vm8, %v716_v63, 0.0 }
 0x28d   :  { %v721_v4 = vadd.f32 %v720_v3, %v719_v2 }
 0x28f   :  { %v693_v6 = vpop.f32.mrb[20].mxu0 }
 0x290   :  { %v703_v7 = vsel %vm361_vm8, %v693_v6, 0.0  ;;  %v717_v8 = vmul.f32 %v693_v6, %v693_v6  ;;  %v695_v9 = vpop.f32.mrb[21].mxu0 }
 0x291   :  { %v704_v11 = vadd.f32 %v703_v7, %v702_v1  ;;  %v696_v12 = vpop.f32.mrb[22].mxu0 }
 0x292   :  { %v722_v13 = vsel %vm361_vm8, %v717_v8, 0.0  ;;  %v705_v14 = vsel %vm361_vm8, %v696_v12, 0.0  ;;  %v718_v15 = vmul.f32 %v696_v12, %v696_v12  ;;  %v698_v16 = vpop.f32.mrb[23].mxu0 }
 0x293   :  { %v723_v17 = vadd.f32 %v722_v13, %v721_v4  ;;  %v706_v18 = vadd.f32 %v705_v14, %v704_v11  ;;  %v929_v13 = vld [vmem:[%s1406_s8 + $0x40] ss:$0 sm:$0xff] }
 0x294   :  { %v724_v19 = vsel %vm361_vm8, %v718_v15, 0.0 }
 0x295   :  { %v707_v20 = vrot.slane %v706_v18, 4  ;;  %v725_v21 = vadd.f32 %v724_v19, %v723_v17 }
 0x297   :  { %v708_v22 = vadd.f32 %v707_v20, %v706_v18  ;;  %v726_v23 = vrot.slane %v725_v21, 4 }
 0x299   :  { %v709_v24 = vrot.slane %v708_v22, 2  ;;  %v727_v25 = vadd.f32 %v726_v23, %v725_v21 }
 0x29b   :  { %v710_v26 = vadd.f32 %v709_v24, %v708_v22  ;;  %v728_v27 = vrot.slane %v727_v25, 2 }
 0x29d   :  { %v711_v28 = vrot.slane %v710_v26, 1  ;;  %v729_v29 = vadd.f32 %v728_v27, %v727_v25 }
 0x29f   :  { %v712_v30 = vadd.f32 %v711_v28, %v710_v26  ;;  %v730_v31 = vrot.slane %v729_v29, 1 }
 0x2a1   :  { %v714_v32 = vmul.f32 0.03125, %v712_v30  ;;  %v731_v33 = vadd.f32 %v730_v31, %v729_v29 }
 0x2a3   :  { %v732_v34 = vmul.f32 0.03125, %v731_v33  ;;  %v733_v46 = vmul.f32 %v714_v32, %v714_v32 }
 0x2a5   :  { %v734_v35 = vsub.f32 %v732_v34, %v733_v46 }
 0x2a7   :  { %v736_v55 = vadd.f32 1e-05, %v734_v35 }
 0x2a9   :  { %1050 = vrsqrt.f32 %v736_v55 }
 0x2b3   :  { %v1051_v5 = vpop.eup %1050 }
 0x2b4   :  { %v738_v37 = vmul.f32 %v1051_v5, %v735_v36 }
 0x2b6   :  { %v740_v39 = vmul.f32 %v738_v37, %v714_v32  ;;  %v745_v40 = vrot.slane %v738_v37, %v1291_v38 }
 0x2b8   :  { %v741_v41 = vsub.f32 %v739_v10, %v740_v39  ;;  %v746_v42 = vmul.f32 %v745_v40, %v685_v50  ;;  %v747_v43 = vmul.f32 %v745_v40, %v688_v60  ;;  %v748_v44 = vmul.f32 %v745_v40, %v693_v6 }
 0x2b9   :  { %v749_v45 = vmul.f32 %v745_v40, %v696_v12 }
 0x2ba   :  { %v753_v47 = vrot.slane %v741_v41, %v1291_v38 }
 0x2bc   :  { %v754_v48 = vadd.f32 %v753_v47, %v746_v42  ;;  %v755_v49 = vadd.f32 %v753_v47, %v747_v43  ;;  %v756_v51 = vadd.f32 %v753_v47, %v748_v44  ;;  %v757_v52 = vadd.f32 %v753_v47, %v749_v45 }
 0x2be   :  { %v760_v53 = vmax.f32 %v756_v51, 0.0  ;;  %v761_v54 = vmax.f32 %v757_v52, 0.0  ;;  %v758_v56 = vmax.f32 %v754_v48, 0.0  ;;  %v759_v57 = vmax.f32 %v755_v49, 0.0 }
 0x2c0   :  { %v771_v58 = vsel %vm361_vm8, %v760_v53, -inf  ;;  %v772_v59 = vsel %vm361_vm8, %v761_v54, -inf  ;;  %v762_v61 = vsel %vm361_vm8, %v758_v56, -inf  ;;  %v763_v50 = vsel %vm361_vm8, %v759_v57, -inf }
 0x2c1   :  { %v773_v60 = vmax.f32 %v771_v58, %v772_v59  ;;  %v764_v62 = vmax.f32 %v762_v61, %v763_v50 }
 0x2c3   :  { %v774_v63 = vrot.slane %v773_v60, 4  ;;  %v765_v38 = vrot.slane %v764_v62, 4 }
 0x2c5   :  { %v775_v0 = vmax.f32 %v773_v60, %v774_v63  ;;  %v766_v1 = vmax.f32 %v764_v62, %v765_v38 }
 0x2c7   :  { %v776_v2 = vrot.slane %v775_v0, 2  ;;  %v767_v3 = vrot.slane %v766_v1, 2 }
 0x2c9   :  { %v777_v4 = vmax.f32 %v775_v0, %v776_v2  ;;  %v768_v6 = vmax.f32 %v766_v1, %v767_v3 }
 0x2cb   :  { %v769_v7 = vrot.slane %v768_v6, 1  ;;  %v778_v8 = vrot.slane %v777_v4, 1 }
 0x2cd   :  { %v770_v9 = vmax.f32 %v768_v6, %v769_v7  ;;  %v779_v11 = vmax.f32 %v777_v4, %v778_v8 }
 0x2cf   :  { %v796_v12 = vsel %vm795_vm13, %v779_v11, %v770_v9 }
 0x2d0   :  { %984 = vmatmul.mubr.msk.f32.vlgmr.msra.gmra.mrb[8].mxu1 %vm361_vm8, %v796_v12 }
 0x3a3   :  { %v865_v14 = vpop.f32.mrb[8].mxu1 }
 0x3a4   :  { %v866_v15 = vadd.f32 %v929_v13, %v865_v14  ;;  %v985_v16 = vpop.f32.mrb[9].mxu1 }
 0x3a6   :  { %870 = vst.msk [vmem:[#allocation2] sm:$0x3] %vm869_vm14, %v866_v15 }
 0x3a7   :  { %1063 = shalt.err (!%p1060_p4)
}
 0x3a8   :  { %s1064_s14 = scalar_lea.hbm %s1407_s9, 32 }
 0x3a9   :  { %p1065_p5 = scmp.ne.s32.totalorder %s1407_s9, %s1064_s14  ;;  %p1068_p6 = scmp.lt.u32.totalorder %s1064_s14, %s1407_s9 }
 0x3ab   :  { %p1070_p7 = pnand %p1068_p6, %p1065_p5 }
 0x3ad   :  { %1073 = shalt.err (!%p1070_p7)
}
 0x3ae   :  { %880 = dma.vmem_to_hbm [thread:$0]  %s878_s12, 32, %s1407_s9, [#allocation3]  }
 0x3af   :  { %1074 = dma.done.wait [#allocation3], 32  }
 0x3b0   :  { %1075 = vsyncadd [#allocation3], 4294967264 }
 0x3b1   :  { %884 = vsyncpa [#allocation3], 1 }

</bundles_post_ra>
